<compile_context>
chip_gen: v7x
topology: tpu7x:2x2x1
jax: 0.10.0
libtpu: 0.0.40
codegen_flags: <defaults>
</compile_context>

<pallas_src>
import functools

import jax
import jax.numpy as jnp
from jax.experimental import pallas as pl
from jax.experimental.pallas import tpu as pltpu

_LANES = 128
_TARGET_TILE_BYTES = 4 * 1024 * 1024   # combined x+y bytes per grid step
_MIN_KERNEL_ELEMENTS = 64 * 1024       # below this, one fused XLA op is faster


def _num_tensorcores():
    """2 on chips whose 'parallel' grid axes shard across TensorCores."""
    try:
        kind = jax.devices()[0].device_kind.lower()
    except Exception:
        return 1
    return 2 if ("7" in kind or "v4" in kind or "v5p" in kind) else 1


def _rmse_partial_kernel(x_ref, y_ref, out_ref, *, rows, block_rows, bpc):
    """Accumulates per-(sublane, lane) partial sums of (x - y)^2 into out_ref."""
    c = pl.program_id(0)   # TensorCore ("parallel") axis
    i = pl.program_id(1)   # sequential block axis

    @pl.when(i == 0)
    def _():
        out_ref[...] = jnp.zeros_like(out_ref)

    b = c * bpc + i                      # logical (unclamped) block index
    rows_left = rows - b * block_rows    # number of valid rows in this block

    def block_partial(d):
        # (block_rows, 128) -> (block_rows//8, 8, 128) only regroups whole
        # (8, 128) tiles; the axis-0 sum is plain VALU adds (no XLU).
        return jnp.sum((d * d).reshape(block_rows // 8, 8, _LANES), axis=0)

    @pl.when(rows_left >= block_rows)
    def _():   # full block: unmasked fast path
        d = x_ref[...].astype(jnp.float32) - y_ref[...].astype(jnp.float32)
        out_ref[...] += block_partial(d)

    @pl.when(jnp.logical_and(rows_left > 0, rows_left < block_rows))
    def _():   # ragged last block: zero out rows past the valid extent
        d = x_ref[...].astype(jnp.float32) - y_ref[...].astype(jnp.float32)
        row_ids = jax.lax.broadcasted_iota(jnp.int32, d.shape, 0)
        d = jnp.where(row_ids < rows_left, d, 0.0)
        out_ref[...] += block_partial(d)
    # rows_left <= 0: the clamped duplicate block on the second core when
    # num_blocks is odd -- its DMA is wasted but nothing is accumulated.


def _sum_sq_diff_pallas(x2, y2, rows, block_rows, num_cores):
    """Returns sum((x2 - y2)^2) over a (rows, 128) slab via Pallas."""
    num_blocks = pl.cdiv(rows, block_rows)
    cores = min(num_cores, num_blocks)
    bpc = pl.cdiv(num_blocks, cores)     # blocks per core

    def in_index(c, i):
        # Clamp so the DMA window always lies inside the array; the kernel
        # skips accumulation for the duplicated (out-of-range) block.
        return (jnp.minimum(c * bpc + i, num_blocks - 1), 0)

    out = pl.pallas_call(
        functools.partial(_rmse_partial_kernel, rows=rows,
                          block_rows=block_rows, bpc=bpc),
        out_shape=jax.ShapeDtypeStruct((cores, 8, _LANES), jnp.float32),
        grid_spec=pltpu.PrefetchScalarGridSpec(
            num_scalar_prefetch=0,
            grid=(cores, bpc),
            in_specs=[
                pl.BlockSpec((block_rows, _LANES), in_index),
                pl.BlockSpec((block_rows, _LANES), in_index),
            ],
            out_specs=pl.BlockSpec((None, 8, _LANES), lambda c, i: (c, 0, 0)),
        ),
        compiler_params=pltpu.CompilerParams(
            dimension_semantics=("parallel", "arbitrary"),
            vmem_limit_bytes=32 * 1024 * 1024),
    )(x2, y2)
    # Final tiny reduce (<= 2*8*128 f32) + mean + sqrt happen in the wrapper.
    return jnp.sum(out)


def rmse_loss(output, targets, *, min_kernel_elements=_MIN_KERNEL_ELEMENTS):
    """sqrt(mean((output - targets)^2)), matching the torch RMSELoss forward."""
    assert output.shape == targets.shape, "MSELoss requires matching shapes"
    n = output.size

    # Tiny inputs: launch / per-step overhead dominates -> pure-JAX fallback.
    if n < max(min_kernel_elements, _LANES):
        d = output.astype(jnp.float32) - targets.astype(jnp.float32)
        return jnp.sqrt(jnp.mean(d * d))

    x = output.reshape(-1)     # native dtypes; kernel upcasts to f32
    y = targets.reshape(-1)

    rows = n // _LANES
    n_main = rows * _LANES

    # Ragged (< 128 element) tail handled in plain JAX instead of padding both
    # full arrays in HBM.  For 128-aligned sizes this branch never runs and
    # the reshape below is a free bitcast.
    tail_sum = jnp.float32(0.0)
    if n_main != n:
        dt = x[n_main:].astype(jnp.float32) - y[n_main:].astype(jnp.float32)
        tail_sum = jnp.sum(dt * dt)
        x = x[:n_main]
        y = y[:n_main]
    x2 = x.reshape(rows, _LANES)
    y2 = y.reshape(rows, _LANES)

    # Dtype-aware block size: keep the combined per-step tile bytes roughly
    # constant so every dtype sits at the HBM-roofline plateau.
    bytes_per_row = _LANES * (x.dtype.itemsize + y.dtype.itemsize)
    sub = max(8, 32 // x.dtype.itemsize, 32 // y.dtype.itemsize)  # sublane pack
    block_rows = min(_TARGET_TILE_BYTES // bytes_per_row, rows)
    block_rows = max(sub, (block_rows // sub) * sub)

    total = _sum_sq_diff_pallas(x2, y2, rows, block_rows, _num_tensorcores())
    # f32 accumulation; per-block (8,128) partial sums give tree-like summation
    # so the error stays small even for very large n.
    return jnp.sqrt((total + tail_sum) / n)


if __name__ == "__main__":
    key = jax.random.PRNGKey(0)
    k1, k2, k3, k4 = jax.random.split(key, 4)

    # 1) Small NCHW-shaped example (typical module use); force the kernel path
    #    so the Pallas code is exercised even below the fallback cutoff.
    out1 = jax.random.normal(k1, (2, 4, 16, 16), dtype=jnp.float32)
    tgt1 = jax.random.normal(k2, (2, 4, 16, 16), dtype=jnp.float32)
    loss1 = rmse_loss(out1, tgt1, min_kernel_elements=0)
    jax.block_until_ready(loss1)
    ref1 = jnp.sqrt(jnp.mean((out1 - tgt1) ** 2))
    assert jnp.allclose(loss1, ref1, rtol=1e-5, atol=1e-6), (loss1, ref1)

    # 2) Larger, ragged (n % 128 != 0), mixed-dtype case: exercises multi-block
    #    accumulation, the masked last block, the pure-JAX tail, and the
    #    native-dtype (bf16 vs f32) streaming.
    out2 = jax.random.normal(k3, (4, 4, 33, 129),
                             dtype=jnp.float32).astype(jnp.bfloat16)
    tgt2 = jax.random.normal(k4, (4, 4, 33, 129), dtype=jnp.float32)
    loss2 = rmse_loss(out2, tgt2)
    jax.block_until_ready(loss2)
    ref2 = jnp.sqrt(jnp.mean(
        (out2.astype(jnp.float32) - tgt2.astype(jnp.float32)) ** 2))
    assert jnp.allclose(loss2, ref2, rtol=1e-4, atol=1e-6), (loss2, ref2)

    print("KERNEL_OK")
</pallas_src>

<mosaic_0001>
module attributes {stable_mosaic.version = 11 : i64} {
  func.func @_rmse_partial_kernel(%arg0: i32, %arg1: i32, %arg2: memref<16x128xf32, #tpu.memory_space<vmem>>, %arg3: memref<16x128xf32, #tpu.memory_space<vmem>>, %arg4: memref<1x8x128xf32, #tpu.memory_space<vmem>>) attributes {dimension_semantics = [#tpu.dimension_semantics<parallel>, #tpu.dimension_semantics<arbitrary>], iteration_bounds = array<i64: 1, 1>, scalar_prefetch = 0 : i64, scratch_operands = 0 : i64, tpu.core_type = #tpu.core_type<tc>, window_params = [{transform_indices = @transform_0, window_bounds = array<i64: 16, 128>}, {transform_indices = @transform_1, window_bounds = array<i64: 16, 128>}, {transform_indices = @transform_2, window_bounds = array<i64: 1, 8, 128>}]} {
    %c0_i32 = arith.constant 0 : i32
    %0 = arith.cmpi eq, %arg1, %c0_i32 : i32
    %1 = arith.extui %0 : i1 to i32
    %c0_i32_0 = arith.constant 0 : i32
    %2 = arith.cmpi ne, %1, %c0_i32_0 : i32
    scf.if %2 {
      %cst = arith.constant 0.000000e+00 : f32
      %15 = vector.broadcast %cst : f32 to vector<8x128xf32>
      %c0 = arith.constant 0 : index
      %c0_7 = arith.constant 0 : index
      %c0_8 = arith.constant 0 : index
      %16 = vector.load %arg4[%c0, %c0_7, %c0_8] : memref<1x8x128xf32, #tpu.memory_space<vmem>>, vector<1x8x128xf32>
      %17 = vector.shape_cast %16 : vector<1x8x128xf32> to vector<8x128xf32>
      %18 = vector.shape_cast %15 : vector<8x128xf32> to vector<1x8x128xf32>
      tpu.vector_store %arg4[%c0, %c0_7, %c0_8], %18 {strides = array<i32>} : memref<1x8x128xf32, #tpu.memory_space<vmem>>, vector<1x8x128xf32>,
    } else {
    }
    %c1_i32 = arith.constant 1 : i32
    %3 = arith.muli %arg0, %c1_i32 : i32
    %4 = arith.addi %3, %arg1 : i32
    %c16_i32 = arith.constant 16 : i32
    %5 = arith.muli %4, %c16_i32 : i32
    %c16_i32_1 = arith.constant 16 : i32
    %6 = arith.subi %c16_i32_1, %5 : i32
    %c16_i32_2 = arith.constant 16 : i32
    %7 = arith.cmpi sge, %6, %c16_i32_2 : i32
    %8 = arith.extui %7 : i1 to i32
    %c0_i32_3 = arith.constant 0 : i32
    %9 = arith.cmpi ne, %8, %c0_i32_3 : i32
    scf.if %9 {
      %c0 = arith.constant 0 : index
      %c0_7 = arith.constant 0 : index
      %15 = vector.load %arg2[%c0, %c0_7] : memref<16x128xf32, #tpu.memory_space<vmem>>, vector<16x128xf32>
      %c0_8 = arith.constant 0 : index
      %c0_9 = arith.constant 0 : index
      %16 = vector.load %arg3[%c0_8, %c0_9] : memref<16x128xf32, #tpu.memory_space<vmem>>, vector<16x128xf32>
      %17 = arith.subf %15, %16 : vector<16x128xf32>
      %c0_10 = arith.constant 0 : index
      %c0_11 = arith.constant 0 : index
      %c0_12 = arith.constant 0 : index
      %18 = vector.load %arg4[%c0_10, %c0_11, %c0_12] : memref<1x8x128xf32, #tpu.memory_space<vmem>>, vector<1x8x128xf32>
      %19 = vector.shape_cast %18 : vector<1x8x128xf32> to vector<8x128xf32>
      %20 = arith.mulf %17, %17 : vector<16x128xf32>
      %21 = vector.shape_cast %20 : vector<16x128xf32> to vector<2x8x128xf32>
      %cst = arith.constant dense<0.000000e+00> : vector<8x128xf32>
      %22 = vector.multi_reduction <add>, %21, %cst [0] : vector<2x8x128xf32> to vector<8x128xf32>
      %23 = arith.addf %19, %22 : vector<8x128xf32>
      %c0_13 = arith.constant 0 : index
      %c0_14 = arith.constant 0 : index
      %c0_15 = arith.constant 0 : index
      %24 = vector.load %arg4[%c0_13, %c0_14, %c0_15] : memref<1x8x128xf32, #tpu.memory_space<vmem>>, vector<1x8x128xf32>
      %25 = vector.shape_cast %24 : vector<1x8x128xf32> to vector<8x128xf32>
      %26 = vector.shape_cast %23 : vector<8x128xf32> to vector<1x8x128xf32>
      tpu.vector_store %arg4[%c0_13, %c0_14, %c0_15], %26 {strides = array<i32>} : memref<1x8x128xf32, #tpu.memory_space<vmem>>, vector<1x8x128xf32>,
    } else {
    }
    %c0_i32_4 = arith.constant 0 : i32
    %10 = arith.cmpi sgt, %6, %c0_i32_4 : i32
    %c16_i32_5 = arith.constant 16 : i32
    %11 = arith.cmpi slt, %6, %c16_i32_5 : i32
    %12 = arith.andi %10, %11 : i1
    %13 = arith.extui %12 : i1 to i32
    %c0_i32_6 = arith.constant 0 : i32
    %14 = arith.cmpi ne, %13, %c0_i32_6 : i32
    scf.if %14 {
      %c0 = arith.constant 0 : index
      %c0_7 = arith.constant 0 : index
      %15 = vector.load %arg2[%c0, %c0_7] : memref<16x128xf32, #tpu.memory_space<vmem>>, vector<16x128xf32>
      %c0_8 = arith.constant 0 : index
      %c0_9 = arith.constant 0 : index
      %16 = vector.load %arg3[%c0_8, %c0_9] : memref<16x128xf32, #tpu.memory_space<vmem>>, vector<16x128xf32>
      %17 = arith.subf %15, %16 : vector<16x128xf32>
      %18 = tpu.iota {dimensions = array<i32: 0>} : vector<16x128xi32>
      %19 = vector.broadcast %6 : i32 to vector<16x128xi32>
      %20 = arith.cmpi slt, %18, %19 : vector<16x128xi32>
      %cst = arith.constant 0.000000e+00 : f32
      %21 = vector.broadcast %cst : f32 to vector<16x128xf32>
      %22 = arith.select %20, %17, %21 : vector<16x128xi1>, vector<16x128xf32>
      %c0_10 = arith.constant 0 : index
      %c0_11 = arith.constant 0 : index
      %c0_12 = arith.constant 0 : index
      %23 = vector.load %arg4[%c0_10, %c0_11, %c0_12] : memref<1x8x128xf32, #tpu.memory_space<vmem>>, vector<1x8x128xf32>
      %24 = vector.shape_cast %23 : vector<1x8x128xf32> to vector<8x128xf32>
      %25 = arith.mulf %22, %22 : vector<16x128xf32>
      %26 = vector.shape_cast %25 : vector<16x128xf32> to vector<2x8x128xf32>
      %cst_13 = arith.constant dense<0.000000e+00> : vector<8x128xf32>
      %27 = vector.multi_reduction <add>, %26, %cst_13 [0] : vector<2x8x128xf32> to vector<8x128xf32>
      %28 = arith.addf %24, %27 : vector<8x128xf32>
      %c0_14 = arith.constant 0 : index
      %c0_15 = arith.constant 0 : index
      %c0_16 = arith.constant 0 : index
      %29 = vector.load %arg4[%c0_14, %c0_15, %c0_16] : memref<1x8x128xf32, #tpu.memory_space<vmem>>, vector<1x8x128xf32>
      %30 = vector.shape_cast %29 : vector<1x8x128xf32> to vector<8x128xf32>
      %31 = vector.shape_cast %28 : vector<8x128xf32> to vector<1x8x128xf32>
      tpu.vector_store %arg4[%c0_14, %c0_15, %c0_16], %31 {strides = array<i32>} : memref<1x8x128xf32, #tpu.memory_space<vmem>>, vector<1x8x128xf32>,
    } else {
    }
    return
  }
  func.func @transform_0(%arg0: i32, %arg1: i32) -> (i32, i32) {
    %c1_i32 = arith.constant 1 : i32
    %0 = arith.muli %arg0, %c1_i32 : i32
    %1 = arith.addi %0, %arg1 : i32
    %c0_i32 = arith.constant 0 : i32
    %2 = arith.minsi %1, %c0_i32 : i32
    %c0_i32_0 = arith.constant 0 : i32
    %c0_i32_1 = arith.constant 0 : i32
    return %2, %c0_i32_0 : i32, i32
  }
  func.func @transform_1(%arg0: i32, %arg1: i32) -> (i32, i32) {
    %c1_i32 = arith.constant 1 : i32
    %0 = arith.muli %arg0, %c1_i32 : i32
    %1 = arith.addi %0, %arg1 : i32
    %c0_i32 = arith.constant 0 : i32
    %2 = arith.minsi %1, %c0_i32 : i32
    %c0_i32_0 = arith.constant 0 : i32
    %c0_i32_1 = arith.constant 0 : i32
    return %2, %c0_i32_0 : i32, i32
  }
  func.func @transform_2(%arg0: i32, %arg1: i32) -> (i32, i32, i32) {
    %c0_i32 = arith.constant 0 : i32
    %c0_i32_0 = arith.constant 0 : i32
    %c0_i32_1 = arith.constant 0 : i32
    return %arg0, %c0_i32, %c0_i32_0 : i32, i32, i32
  }
}

</mosaic_0001>

<bundles_post_ra>
// kernel: tpu_custom_call.1
= control target key start
LH: loop header
LB: loop body
LE: loop exit
PB: predicated region body
PF: predicated region fallthrough
CT: control target
= control target key end

     0   :  { %7 = vsyncpa [#allocation3], 0  ;;  %s264_s0 = inlined_call_operand.hbm [shape: f32[16,128], index: 0, kind: input, shape index: {}]   ;;  %s265_s1 = inlined_call_operand.hbm [shape: f32[16,128], index: 1, kind: input, shape index: {}]   ;;  %s266_s2 = inlined_call_operand.hbm [shape: f32[1,8,128], index: 2, kind: output, shape index: {}]  }
   0x1   :  { %8 = vsyncpa [#allocation6], 0 }
   0x2   :  { %9 = vsyncpa [#allocation4], 0  ;;  %s208_s9 = smov [#allocation2]   ;;  %s136_s13 = scalar_lea.hbm %s264_s0, 256 }
   0x3   :  { %s21_s10 = sshll.u32 %s208_s9, 4  ;;  %p137_p0 = scmp.ne.s32.totalorder %s264_s0, %s136_s13  ;;  %s22_s10 = int_to_ptr.vmem [resolvable:$true] %s21_s10 }
   0x4   :  { %p140_p1 = scmp.lt.u32.totalorder %s136_s13, %s264_s0 }
   0x6   :  { %p142_p2 = pnand %p140_p1, %p137_p0 }
   0x8   :  { %145 = shalt.err (!%p142_p2)
}
   0x9   :  { %s146_s18 = scalar_lea.vmem %s22_s10, 256  ;;  %p151_p4 = scmp.lt.s32.totalorder %s22_s10, %s22_s10 }
   0xa   :  { %p147_p3 = scmp.ne.s32.totalorder %s22_s10, %s146_s18  ;;  %p152_p5 = scmp.lt.s32.totalorder %s146_s18, %s146_s18 }
   0xc   :  { %p153_p6 = por %p152_p5, %p151_p4 }
   0xe   :  { %p154_p7 = pnand %p153_p6, %p147_p3 }
  0x10   :  { %157 = shalt.err (!%p154_p7)
}
  0x11   :  { %s209_s19 = smov 128   ;;  %s210_s20 = smov 8  }
  0x12   :  { %27 = dma.hbm_to_vmem [thread:$0]  %s264_s0, 256, %s22_s10, [#allocation3], %s209_s19, %s209_s19, %s210_s20  }
  0x13   :  { %s211_s23 = smov [#allocation5]   ;;  %s158_s27 = scalar_lea.hbm %s265_s1, 256 }
  0x14   :  { %s39_s24 = sshll.u32 %s211_s23, 4  ;;  %p159_p8 = scmp.ne.s32.totalorder %s265_s1, %s158_s27  ;;  %s40_s24 = int_to_ptr.vmem [resolvable:$true] %s39_s24 }
  0x15   :  { %p162_p9 = scmp.lt.u32.totalorder %s158_s27, %s265_s1 }
  0x17   :  { %p164_p10 = pnand %p162_p9, %p159_p8 }
  0x19   :  { %167 = shalt.err (!%p164_p10)
}
  0x1a   :  { %s168_s4 = scalar_lea.vmem %s40_s24, 256  ;;  %p173_p12 = scmp.lt.s32.totalorder %s40_s24, %s40_s24 }
  0x1b   :  { %p169_p11 = scmp.ne.s32.totalorder %s40_s24, %s168_s4  ;;  %p174_p13 = scmp.lt.s32.totalorder %s168_s4, %s168_s4 }
  0x1d   :  { %p175_p0 = por %p174_p13, %p173_p12 }
  0x1f   :  { %p176_p1 = pnand %p175_p0, %p169_p11 }
  0x21   :  { %179 = shalt.err (!%p176_p1)
}
  0x22   :  { %45 = dma.hbm_to_vmem [thread:$0]  %s265_s1, 256, %s40_s24, [#allocation6], %s209_s19, %s209_s19, %s210_s20  }
  0x23   :  { %202 = dma.done.wait [#allocation3], 256  }
  0x24   :  { %203 = vsyncadd [#allocation3], 4294967040 }
  0x25   :  { %204 = dma.done.wait [#allocation6], 256  }
  0x26   :  { %205 = vsyncadd [#allocation6], 4294967040  ;;  %v72_v0 = vld [vmem:[#allocation2] sm:$0xff]  ;;  %v73_v1 = vld [vmem:[#allocation2 + $0x8] sm:$0xff]  ;;  %s212_s6 = smov [#allocation7]  }
  0x27   :  { %v74_v2 = vld [vmem:[#allocation5] sm:$0xff]  ;;  %v75_v3 = vld [vmem:[#allocation5 + $0x8] sm:$0xff]  ;;  %s116_s7 = sshll.u32 %s212_s6, 4  ;;  %s117_s7 = int_to_ptr.vmem [resolvable:$true] %s116_s7 }
  0x28   :  { %v76_v4 = vsub.f32 %v72_v0, %v74_v2  ;;  %v77_v5 = vsub.f32 %v73_v1, %v75_v3  ;;  %s180_s8 = scalar_lea.vmem %s117_s7, 128  ;;  %p185_p3 = scmp.lt.s32.totalorder %s117_s7, %s117_s7 }
  0x29   :  { %p181_p2 = scmp.ne.s32.totalorder %s117_s7, %s180_s8  ;;  %p186_p4 = scmp.lt.s32.totalorder %s180_s8, %s180_s8 }
  0x2a   :  { %v79_v6 = vmul.f32 %v76_v4, %v76_v4  ;;  %v80_v7 = vmul.f32 %v77_v5, %v77_v5 }
  0x2b   :  { %p187_p5 = por %p186_p4, %p185_p3 }
  0x2c   :  { %v81_v8 = vadd.f32 %v80_v7, %v79_v6 }
  0x2d   :  { %p188_p6 = pnand %p187_p5, %p181_p2 }
  0x2e   :  { %83 = vst [vmem:[#allocation7] sm:$0xff] %v81_v8 }
  0x2f   :  { %191 = shalt.err (!%p188_p6)
}
  0x30   :  { %s192_s10 = scalar_lea.hbm %s266_s2, 128 }
  0x31   :  { %p193_p7 = scmp.ne.s32.totalorder %s266_s2, %s192_s10  ;;  %p196_p8 = scmp.lt.u32.totalorder %s192_s10, %s266_s2 }
  0x33   :  { %p198_p9 = pnand %p196_p8, %p193_p7 }
  0x35   :  { %201 = shalt.err (!%p198_p9)
}
  0x36   :  { %119 = dma.vmem_to_hbm [thread:$0]  %s117_s7, 128, %s266_s2, [#allocation4]  }
  0x37   :  { %206 = dma.done.wait [#allocation4], 128  }
  0x38   :  { %207 = vsyncadd [#allocation4], 4294967168 }
  0x39   :  { %123 = vsyncpa [#allocation3], 1 }
  0x3a   :  { %124 = vsyncpa [#allocation6], 1 }
  0x3b   :  { %125 = vsyncpa [#allocation4], 1 }

</bundles_post_ra>
